<compile_context>
chip_gen: v7x
topology: tpu7x:2x2x1
jax: 0.10.0
libtpu: 0.0.40
codegen_flags: <defaults>
</compile_context>

<pallas_src>
import jax
import jax.numpy as jnp
import numpy as np
from jax import lax
from jax.experimental import pallas as pl
from jax.experimental.pallas import tpu as pltpu

# ---- FakeBN folded stats/affine baked into the PyTorch module ------------------
_MEAN = -8.728156899451278e-07
_VAR = 0.021395351737737656
_EPS = 1e-05
_GAMMA = 3.715294599533081
_BETA = 0.1172400712966919
# y = ((x - mean)/sqrt(var+eps))*gamma + beta == x*SCALE + SHIFT
_SCALE = np.float32(_GAMMA / np.sqrt(_VAR + _EPS))
_SHIFT = np.float32(_BETA - _MEAN * (_GAMMA / np.sqrt(_VAR + _EPS)))

# ---- Conv1d hyper-parameters from the module ------------------------------------
_K = 85        # kernel size
_STRIDE = 32
_C_OUT = 3


def _round_up(a, b):
    return ((a + b - 1) // b) * b


def _pick_batch_tile(n):
    """Largest divisor of n that keeps >=2 grid steps and <=256 rows per step."""
    if n <= 1:
        return 1
    cap = max(1, min(256, n // 2))
    tb = 1
    for d in range(1, cap + 1):
        if n % d == 0:
            tb = d
    return tb


# =================================================================================
# Fused FakeBN -> Conv1d -> Abs kernel
# =================================================================================
def _bn_conv_abs_kernel(x_ref, w_ref, b_ref, o_ref, xpad_ref):
    # x_ref:    (TB, 1, L)        raw input rows (pre-BN)
    # w_ref:    (K_pad, CT_pad)   banded conv-weight matrix
    # b_ref:    (1, CT_pad)       conv bias broadcast over flattened (c, o) columns
    # o_ref:    (TB, 1, CT_pad)   |Conv1d(FakeBN(x)) + bias|
    # xpad_ref: VMEM (TB_pad, K_pad) zero-padded, BN'd staging buffer
    xpad_ref[...] = jnp.zeros_like(xpad_ref)
    xb = x_ref[:, 0, :].astype(jnp.float32) * _SCALE + _SHIFT   # fused FakeBN affine
    tb, l = xb.shape
    xpad_ref[:tb, :l] = xb
    # Conv1d as one (8,128)-aligned MXU matmul against the banded weight matrix.
    acc = jnp.dot(xpad_ref[...], w_ref[...], preferred_element_type=jnp.float32)
    y = jnp.abs(acc + b_ref[...])                                # bias + Abs()
    o_ref[:, 0, :] = y[:tb].astype(o_ref.dtype)


def bn_conv_abs(x, conv_w, conv_b):
    """Fused FakeBN -> Conv1d(1, 3, 85, stride=32, VALID, bias) -> Abs.

    x: (N, 1, L) float, conv_w: (3, 1, 85) or (3, 85), conv_b: (3,).
    Returns (N, 3, T) with T = (L - 85)//32 + 1.
    """
    n, c_in, l = x.shape
    assert c_in == 1
    t = (l - _K) // _STRIDE + 1
    assert t >= 1
    ct = _C_OUT * t
    k_pad = _round_up(l, 128)
    ct_pad = _round_up(ct, 128)

    # Banded matrix B with B[stride*o + k, c*t + o] = w[c, k], so that
    # (bn(x) @ B)[n, c*t + o] == Conv1d(bn(x))[n, c, o].  Built once per weight set
    # (tiny: k_pad x ct_pad f32); should be cached per-model in real use.
    w2 = conv_w.reshape(_C_OUT, _K).astype(jnp.float32)
    o_i = np.arange(t)
    k_i = np.arange(_K)
    c_i = np.arange(_C_OUT)
    rows = np.broadcast_to(_STRIDE * o_i[None, :, None] + k_i[None, None, :],
                           (_C_OUT, t, _K)).reshape(-1)
    cols = np.broadcast_to(c_i[:, None, None] * t + o_i[None, :, None],
                           (_C_OUT, t, _K)).reshape(-1)
    vals = jnp.broadcast_to(w2[:, None, :], (_C_OUT, t, _K)).reshape(-1)
    w_band = jnp.zeros((k_pad, ct_pad), jnp.float32).at[rows, cols].set(vals)
    bias_row = jnp.zeros((1, ct_pad), jnp.float32).at[0, :ct].set(
        jnp.repeat(conv_b.astype(jnp.float32), t))

    tb = _pick_batch_tile(n)          # >=2 parallel grid steps whenever n >= 2
    tb_pad = max(8, _round_up(tb, 8))
    grid = (n // tb,)

    out = pl.pallas_call(
        _bn_conv_abs_kernel,
        out_shape=jax.ShapeDtypeStruct((n, 1, ct_pad), x.dtype),
        grid=grid,
        in_specs=[
            pl.BlockSpec((tb, 1, l), lambda i: (i, 0, 0)),
            pl.BlockSpec((k_pad, ct_pad), lambda i: (0, 0)),
            pl.BlockSpec((1, ct_pad), lambda i: (0, 0)),
        ],
        out_specs=pl.BlockSpec((tb, 1, ct_pad), lambda i: (i, 0, 0)),
        scratch_shapes=[pltpu.VMEM((tb_pad, k_pad), jnp.float32)],
        compiler_params=pltpu.CompilerParams(
            dimension_semantics=("parallel",)),
        cost_estimate=pl.CostEstimate(
            flops=2 * n * l + 2 * n * k_pad * ct_pad,
            transcendentals=0,
            bytes_accessed=4 * (n * l + k_pad * ct_pad + ct_pad + n * ct_pad)),
    )(x, w_band, bias_row)

    # Columns are already in FlattenM(1) order (c*t + o); drop the lane padding.
    return out[:, 0, :ct].reshape(n, _C_OUT, t)


# =================================================================================
# Standalone FakeBN kernel (general elementwise utility, review fixes applied)
# =================================================================================
def _fake_bn_kernel(x_ref, o_ref):
    y = x_ref[...].astype(jnp.float32) * _SCALE + _SHIFT
    o_ref[...] = y.astype(o_ref.dtype)


def fake_bn(x, *, donate=False):
    """FakeBN (y = x*SCALE + SHIFT) as a lane-dense, tiled Pallas kernel.

    Copy-free wrapper: no pad, no slice.  Shapes with no copy-free lane-dense 2D
    view (total not a multiple of 128, or too small to tile) are left to plain XLA,
    which fuses a 2-op affine for free instead of paying extra HBM passes.
    """
    if not jnp.issubdtype(x.dtype, jnp.floating):
        raise TypeError(f"fake_bn expects a floating dtype, got {x.dtype}")
    total = int(np.prod(x.shape))

    if x.ndim >= 2 and x.shape[-1] % 128 == 0 and 128 <= x.shape[-1] <= 8192:
        lane_w = x.shape[-1]                      # natural lane-dense trailing dim
    else:
        lane_w = next((w for w in (512, 256, 128) if total % w == 0), None)

    if lane_w is None or total // lane_w < 16:    # fallback: leave to XLA fusion
        return (x.astype(jnp.float32) * _SCALE + _SHIFT).astype(x.dtype)

    rows = total // lane_w
    x2d = x.reshape(rows, lane_w)                 # contiguous view: no pad, no copy
    itemsize = x.dtype.itemsize
    sub = {4: 8, 2: 16, 1: 32}.get(itemsize, 8)   # sublane packing multiple

    # ~4 MiB per block (dtype-scaled), and always >=2 grid steps so the "parallel"
    # axis can be sharded across both v7x TensorCores.
    tile_r = max(sub, min(rows, (4 * 1024 * 1024) // (lane_w * itemsize)))
    tile_r = _round_up(tile_r, sub)
    if rows >= 2 * sub and tile_r >= rows:
        tile_r = _round_up(pl.cdiv(rows, 2), sub)
    grid = (pl.cdiv(rows, tile_r),)               # final block may be partial

    out2d = pl.pallas_call(
        _fake_bn_kernel,
        out_shape=jax.ShapeDtypeStruct(x2d.shape, x.dtype),
        grid=grid,
        in_specs=[pl.BlockSpec((tile_r, lane_w), lambda i: (i, 0))],
        out_specs=pl.BlockSpec((tile_r, lane_w), lambda i: (i, 0)),
        compiler_params=pltpu.CompilerParams(
            dimension_semantics=("parallel",),
            vmem_limit_bytes=32 * 1024 * 1024),
        cost_estimate=pl.CostEstimate(
            flops=2 * total, transcendentals=0,
            bytes_accessed=2 * total * itemsize),
        input_output_aliases=({0: 0} if donate else {}),
    )(x2d)
    return out2d.reshape(x.shape)


# =================================================================================
# Module forward (as far as the provided spec allows)
# =================================================================================
def gatech_net_qat_forward(x, conv_w, conv_b):
    """Gatech_net_QAT forward up to (and including) the Abs stage.

    x: (N, 1, L, W) as in the PyTorch module; the trailing dim is sliced at 0.
    """
    x3 = x[:, :, :, 0]                       # module: x = x[:, :, :, 0]
    y = bn_conv_abs(x3, conv_w, conv_b)      # fused FakeBN -> Conv1d -> Abs
    # TODO(synk): Custom_Start/FakeQuant/DataWrapper, FlattenM, Dropout, the quantized
    # Linear(111->20->2) stack (Max_Quant/Max_ReLU/Max_Out_quant) and Stop depend on
    # base classes (Quant, LinQuantWeight, FakeQuant, DataWrapper, Stop, Linear,
    # Sequential) not included in the spec, so the pipeline stops after Abs.
    return y


if __name__ == "__main__":
    key = jax.random.PRNGKey(0)
    kx, kw, kb = jax.random.split(key, 3)

    # L = 1237 gives conv output length 37 -> 3*37 = 111 flattened features,
    # matching the module's Linear(111, 20).  Trailing dim 4 is sliced at index 0.
    n, l = 2, 1237
    x = jax.random.normal(kx, (n, 1, l, 4), dtype=jnp.float32)
    conv_w = 0.02 * jax.random.normal(kw, (_C_OUT, 1, _K), dtype=jnp.float32)
    conv_b = 0.1 * jax.random.normal(kb, (_C_OUT,), dtype=jnp.float32)

    fwd = jax.jit(gatech_net_qat_forward)
    y = fwd(x, conv_w, conv_b)
    jax.block_until_ready(y)

    # Reference (original op order): BN -> Conv1d -> Abs in plain JAX.
    x3 = x[:, :, :, 0]
    ref_bn = (((x3 - _MEAN) / np.sqrt(_VAR + _EPS)) * _GAMMA) + _BETA
    ref = jnp.abs(
        lax.conv_general_dilated(
            ref_bn, conv_w, window_strides=(_STRIDE,), padding="VALID",
            dimension_numbers=("NCH", "OIH", "NCH"))
        + conv_b.reshape(1, _C_OUT, 1))
    assert y.shape == ref.shape == (n, _C_OUT, 37)
    # Loose-ish tolerance: both sides push the f32 contraction through the MXU with
    # (possibly different) bf16-pass precision.
    np.testing.assert_allclose(np.asarray(y), np.asarray(ref), rtol=5e-2, atol=1e-1)

    # Standalone FakeBN kernel: copy-free lane-dense Pallas path ...
    xb_big = jax.random.normal(kx, (16, 2048), dtype=jnp.float32)
    yb = fake_bn(xb_big)
    jax.block_until_ready(yb)
    ref_b = (((xb_big - _MEAN) / np.sqrt(_VAR + _EPS)) * _GAMMA) + _BETA
    np.testing.assert_allclose(np.asarray(yb), np.asarray(ref_b), rtol=1e-5, atol=1e-5)

    # ... and the XLA-fusion fallback on the module's own (non-128-divisible) shape.
    yf = fake_bn(x3)
    jax.block_until_ready(yf)
    np.testing.assert_allclose(np.asarray(yf), np.asarray(ref_bn), rtol=1e-5, atol=1e-5)

    print("KERNEL_OK")
</pallas_src>

<mosaic_0001>
module attributes {stable_mosaic.version = 11 : i64} {
  func.func @_bn_conv_abs_kernel(%arg0: i32, %arg1: memref<1x1x1237xf32, #tpu.memory_space<vmem>>, %arg2: memref<1280x128xf32, #tpu.memory_space<vmem>>, %arg3: memref<1x128xf32, #tpu.memory_space<vmem>>, %arg4: memref<1x1x128xf32, #tpu.memory_space<vmem>>, %arg5: memref<8x1280xf32, #tpu.memory_space<vmem>>) attributes {dimension_semantics = [#tpu.dimension_semantics<parallel>], iteration_bounds = array<i64: 2>, scalar_prefetch = 0 : i64, scratch_operands = 1 : i64, tpu.core_type = #tpu.core_type<tc>, window_params = [{transform_indices = @transform_0, window_bounds = array<i64: 1, 1, 1237>}, {pipeline_mode = #tpu.pipeline_mode<synchronous>, transform_indices = @transform_1, window_bounds = array<i64: 1280, 128>}, {pipeline_mode = #tpu.pipeline_mode<synchronous>, transform_indices = @transform_2, window_bounds = array<i64: 1, 128>}, {transform_indices = @transform_3, window_bounds = array<i64: 1, 1, 128>}]} {
    %cst = arith.constant 0.000000e+00 : f32
    %0 = vector.broadcast %cst : f32 to vector<8x1280xf32>
    %c0 = arith.constant 0 : index
    %c0_0 = arith.constant 0 : index
    %1 = vector.load %arg5[%c0, %c0_0] : memref<8x1280xf32, #tpu.memory_space<vmem>>, vector<8x1280xf32>
    tpu.vector_store %arg5[%c0, %c0_0], %0 {strides = array<i32>} : memref<8x1280xf32, #tpu.memory_space<vmem>>, vector<8x1280xf32>,
    %c0_1 = arith.constant 0 : index
    %c0_2 = arith.constant 0 : index
    %c0_3 = arith.constant 0 : index
    %2 = vector.load %arg1[%c0_1, %c0_2, %c0_3] : memref<1x1x1237xf32, #tpu.memory_space<vmem>>, vector<1x1x1237xf32>
    %3 = vector.shape_cast %2 : vector<1x1x1237xf32> to vector<1x1237xf32>
    %cst_4 = arith.constant 25.3940563 : f32
    %4 = vector.broadcast %cst_4 : f32 to vector<1x1237xf32>
    %5 = arith.mulf %3, %4 : vector<1x1237xf32>
    %cst_5 = arith.constant 0.117262237 : f32
    %6 = vector.broadcast %cst_5 : f32 to vector<1x1237xf32>
    %7 = arith.addf %5, %6 : vector<1x1237xf32>
    %c0_6 = arith.constant 0 : index
    %c0_7 = arith.constant 0 : index
    %8 = vector.load %arg5[%c0_6, %c0_7] : memref<8x1280xf32, #tpu.memory_space<vmem>>, vector<1x1237xf32>
    tpu.vector_store %arg5[%c0_6, %c0_7], %7 {strides = array<i32>} : memref<8x1280xf32, #tpu.memory_space<vmem>>, vector<1x1237xf32>,
    %c0_8 = arith.constant 0 : index
    %c0_9 = arith.constant 0 : index
    %9 = vector.load %arg5[%c0_8, %c0_9] : memref<8x1280xf32, #tpu.memory_space<vmem>>, vector<8x1280xf32>
    %c0_10 = arith.constant 0 : index
    %c0_11 = arith.constant 0 : index
    %10 = vector.load %arg2[%c0_10, %c0_11] : memref<1280x128xf32, #tpu.memory_space<vmem>>, vector<1280x128xf32>
    %cst_12 = arith.constant dense<0.000000e+00> : vector<8x128xf32>
    %11 = tpu.matmul %9, %10, %cst_12 {dimension_numbers = #tpu.dot_dimension_numbers<[1], [0], [0], [1], [0, 0, 1, 1], [], []>} : vector<8x1280xf32>, vector<1280x128xf32>, vector<8x128xf32> -> vector<8x128xf32>
    %c0_13 = arith.constant 0 : index
    %c0_14 = arith.constant 0 : index
    %12 = vector.load %arg3[%c0_13, %c0_14] : memref<1x128xf32, #tpu.memory_space<vmem>>, vector<1x128xf32>
    %13 = vector.broadcast %12 : vector<1x128xf32> to vector<8x128xf32>
    %14 = arith.addf %11, %13 : vector<8x128xf32>
    %15 = math.absf %14 : vector<8x128xf32>
    %16 = vector.extract_strided_slice %15 {offsets = [0, 0], sizes = [1, 128], strides = [1, 1]} : vector<8x128xf32> to vector<1x128xf32>
    %c0_15 = arith.constant 0 : index
    %c0_16 = arith.constant 0 : index
    %c0_17 = arith.constant 0 : index
    %17 = vector.load %arg4[%c0_15, %c0_16, %c0_17] : memref<1x1x128xf32, #tpu.memory_space<vmem>>, vector<1x1x128xf32>
    %18 = vector.shape_cast %17 : vector<1x1x128xf32> to vector<1x128xf32>
    %19 = vector.shape_cast %16 : vector<1x128xf32> to vector<1x1x128xf32>
    tpu.vector_store %arg4[%c0_15, %c0_16, %c0_17], %19 {strides = array<i32>} : memref<1x1x128xf32, #tpu.memory_space<vmem>>, vector<1x1x128xf32>,
    return
  }
  func.func @transform_0(%arg0: i32) -> (i32, i32, i32) {
    %c0_i32 = arith.constant 0 : i32
    %c0_i32_0 = arith.constant 0 : i32
    %c0_i32_1 = arith.constant 0 : i32
    return %arg0, %c0_i32, %c0_i32_0 : i32, i32, i32
  }
  func.func @transform_1(%arg0: i32) -> (i32, i32) {
    %c0_i32 = arith.constant 0 : i32
    %c0_i32_0 = arith.constant 0 : i32
    %c0_i32_1 = arith.constant 0 : i32
    return %c0_i32, %c0_i32_0 : i32, i32
  }
  func.func @transform_2(%arg0: i32) -> (i32, i32) {
    %c0_i32 = arith.constant 0 : i32
    %c0_i32_0 = arith.constant 0 : i32
    %c0_i32_1 = arith.constant 0 : i32
    return %c0_i32, %c0_i32_0 : i32, i32
  }
  func.func @transform_3(%arg0: i32) -> (i32, i32, i32) {
    %c0_i32 = arith.constant 0 : i32
    %c0_i32_0 = arith.constant 0 : i32
    %c0_i32_1 = arith.constant 0 : i32
    return %arg0, %c0_i32, %c0_i32_0 : i32, i32, i32
  }
}

</mosaic_0001>

<bundles_post_ra>
// kernel: squeeze.3
= control target key start
LH: loop header
LB: loop body
LE: loop exit
PB: predicated region body
PF: predicated region fallthrough
CT: control target
= control target key end

     0   :  { %vm7_vm0 = vcmask 302080   ;;  %s36_s8 = smov 54   ;;  %s56_s0 = inlined_call_operand.vmem [shape: f32[2,111], index: 0, kind: input, shape index: {}]   ;;  %s57_s1 = inlined_call_operand.vmem [shape: f32[2,3,37], index: 1, kind: output, shape index: {}]  }
   0x1   :  { %v4_v0 = vld [vmem:[%s56_s0] sm:$0x3]  ;;  %s35_s0 = smov 91  }
   0x2   :  { %5 = vst [vmem:[#allocation1] sm:$0x3] %v4_v0 }
   0x9   :  { %v9_v1 = vld [vmem:[#allocation1] sm:$0x3]  }
   0xa   :  { %v6_v2 = vld [vmem:[#allocation1] sm:$0x3]   ;;  %10 = vrot.lane.b32.xlu0 %v9_v1, %s35_s0 }
   0xb   :  { %8 = vst.msk [vmem:[#allocation0] ss:$8 sm:$0x3] %vm7_vm0, %v6_v2   ;;  %v15_v3 = vld [vmem:[#allocation1] sm:$0x3]  }
   0xe   :  { %16 = vrot.lane.b32.xlu0 %v15_v3, %s36_s8 }
  0x7c   :  { %v11_v4 = vpop.permute.xlu0 %10  }
  0x7d   :  { %14 = vst.msk [vmem:[#allocation0 + $0x1] ss:$8 sm:$0x3] %vm7_vm0, %v11_v4  }
  0x80   :  { %v17_v5 = vpop.permute.xlu0 %16  }
  0x81   :  { %20 = vst.msk [vmem:[#allocation0 + $0x2] ss:$8 sm:$0x3] %vm7_vm0, %v17_v5  }
  0x88   :  { %v24_v6 = vld [vmem:[#allocation0] sm:$0xf]  ;;  %v28_v7 = vld [vmem:[#allocation0 + $0x8] sm:$0xf] }
  0x89   :  { %26 = vst [vmem:[%s57_s1] sm:$0xf] %v24_v6  ;;  %32 = vst [vmem:[%s57_s1 + $0x4] sm:$0xf] %v28_v7 }

// kernel: gatech_net_qat_forward.1
= control target key start
LH: loop header
LB: loop body
LE: loop exit
PB: predicated region body
PF: predicated region fallthrough
CT: control target
= control target key end

     0   :  { %s1147_s12 = smov 0   ;;  %s1665_s0 = inlined_call_operand.vmem [shape: f32[2,1,1237], index: 0, kind: input, shape index: {}]   ;;  %s1666_s1 = inlined_call_operand.vmem [shape: f32[1280,128], index: 1, kind: input, shape index: {}]   ;;  %s1667_s2 = inlined_call_operand.vmem [shape: f32[1,128], index: 2, kind: input, shape index: {}]   ;;  %s1668_s3 = inlined_call_operand.vmem [shape: f32[2,1,128], index: 3, kind: output, shape index: {}]  }
   0x1 LB: > { %s765_s13 = sadd.s32 4294967295, %s1124_s12   ;;  %p769_p0 = scmp.ge.s32.totalorder %s1124_s12, 1  ;;  %s1124_s12 = sphi %s1147_s12, %s13_s12  }
   0x2   : > { %p136_p1 = scmp.lt.s32.totalorder %s1124_s12, 3 }
   0x4   : > { %p137_p2 = pnand %p769_p0, %p136_p1 }
   0x5   : > { %v215_v0 = vld [vmem:[%s1666_s1 + $0x80] sm:$0xff] (!%p137_p2)  ;;  %v216_v1 = vld [vmem:[%s1666_s1 + $0x88] sm:$0xff] (!%p137_p2)  ;;  %v1126_v7 = vmov (!%p137_p2), 0.0   ;;  %v217_v12 = vld [vmem:[%s1666_s1 + $0x90] sm:$0xff] (!%p137_p2)  ;;  %p1211_p3 = scmp.lt.s32.totalorder (!%p137_p2), %s765_s13, 1 }
   0x6   : > { %140 = sbr.rel (%p137_p2) target bundleno = 324 (0x144), region = 32  ;;  %v199_v2 = vld [vmem:[%s1666_s1] sm:$0xff] (!%p137_p2)  ;;  %v948_v3 = vpack.c.bf16 (!%p137_p2), %v216_v1, %v215_v0  ;;  %v200_v4 = vld [vmem:[%s1666_s1 + $0x8] sm:$0xff] (!%p137_p2)  ;;  %164 = vst [vmem:[#allocation2] sm:$0xff] (!%p137_p2), %v1126_v7  ;;  %165 = vst [vmem:[#allocation2 + $0x8] sm:$0xff] (!%p137_p2), %v1126_v7 }
   0x7   : > { %v247_v5 = vld [vmem:[%s1666_s1 + $0x180] sm:$0xff] (!%p137_p2)  ;;  %v248_v6 = vld [vmem:[%s1666_s1 + $0x188] sm:$0xff] (!%p137_p2)  ;;  %166 = vst [vmem:[#allocation2 + $0x10] sm:$0xff] (!%p137_p2), %v1126_v7  ;;  %167 = vst [vmem:[#allocation2 + $0x18] sm:$0xff] (!%p137_p2), %v1126_v7  ;;  %v950_v8 = vpack.c.bf16 (!%p137_p2), %v200_v4, %v199_v2 }
   0x8   : > { %168 = vst [vmem:[#allocation2 + $0x20] sm:$0xff] (!%p137_p2), %v1126_v7  ;;  %169 = vst [vmem:[#allocation2 + $0x28] sm:$0xff] (!%p137_p2), %v1126_v7  ;;  %v980_v9 = vpack.c.bf16 (!%p137_p2), %v248_v6, %v247_v5  ;;  %v231_v10 = vld [vmem:[%s1666_s1 + $0x100] sm:$0xff] (!%p137_p2)  ;;  %v232_v11 = vld [vmem:[%s1666_s1 + $0x108] sm:$0xff] (!%p137_p2)  ;;  %949 = vmatprep.subr.bf16.mxu0 (!%p137_p2), %v948_v3 }
   0x9   : > { %170 = vst [vmem:[#allocation2 + $0x30] sm:$0xff] (!%p137_p2), %v1126_v7  ;;  %171 = vst [vmem:[#allocation2 + $0x38] sm:$0xff] (!%p137_p2), %v1126_v7  ;;  %v982_v13 = vpack.c.bf16 (!%p137_p2), %v232_v11, %v231_v10  ;;  %v218_v14 = vld [vmem:[%s1666_s1 + $0x98] sm:$0xff] (!%p137_p2)  ;;  %v201_v15 = vld [vmem:[%s1666_s1 + $0x10] sm:$0xff] (!%p137_p2)  ;;  %951 = vmatpush3.bf16.msra.mxu0 (!%p137_p2), %v950_v8 }
   0xa   : > { %172 = vst [vmem:[#allocation2 + $0x40] sm:$0xff] (!%p137_p2), %v1126_v7  ;;  %173 = vst [vmem:[#allocation2 + $0x48] sm:$0xff] (!%p137_p2), %v1126_v7  ;;  %v202_v16 = vld [vmem:[%s1666_s1 + $0x18] sm:$0xff] (!%p137_p2)  ;;  %981 = vmatprep.subr.bf16.mxu1 (!%p137_p2), %v980_v9  ;;  %v952_v17 = vpack.c.bf16 (!%p137_p2), %v218_v14, %v217_v12  ;;  %v249_v19 = vld [vmem:[%s1666_s1 + $0x190] sm:$0xff] (!%p137_p2) }
   0xb   : > { %v954_v18 = vpack.c.bf16 (!%p137_p2), %v202_v16, %v201_v15  ;;  %v250_v20 = vld [vmem:[%s1666_s1 + $0x198] sm:$0xff] (!%p137_p2)  ;;  %v233_v21 = vld [vmem:[%s1666_s1 + $0x110] sm:$0xff] (!%p137_p2)  ;;  %983 = vmatpush3.bf16.msra.mxu1 (!%p137_p2), %v982_v13  ;;  %v219_v24 = vld [vmem:[%s1666_s1 + $0xa0] sm:$0xff] (!%p137_p2) }
   0xc   : > { %v984_v22 = vpack.c.bf16 (!%p137_p2), %v250_v20, %v249_v19  ;;  %v234_v23 = vld [vmem:[%s1666_s1 + $0x118] sm:$0xff] (!%p137_p2)  ;;  %v220_v25 = vld [vmem:[%s1666_s1 + $0xa8] sm:$0xff] (!%p137_p2)  ;;  %953 = vmatprep.subr.bf16.mxu0 (!%p137_p2), %v952_v17  ;;  %v203_v28 = vld [vmem:[%s1666_s1 + $0x20] sm:$0xff] (!%p137_p2) }
   0xd   : > { %v986_v26 = vpack.c.bf16 %v234_v23, %v233_v21  ;;  %v956_v27 = vpack.c.bf16 %v220_v25, %v219_v24  ;;  %v204_v29 = vld [vmem:[%s1666_s1 + $0x28] sm:$0xff]  ;;  %v251_v30 = vld [vmem:[%s1666_s1 + $0x1a0] sm:$0xff]  ;;  %955 = vmatpush3.bf16.msra.mxu0 %v954_v18  ;;  %v221_v36 = vld [vmem:[%s1666_s1 + $0xb0] sm:$0xff]  ;;  %s1671_s13 = smov (!%p1211_p3, %s765_s13), 1 }
   0xe   : > { %985 = vmatprep.subr.bf16.mxu1 %v984_v22  ;;  %v252_v31 = vld [vmem:[%s1666_s1 + $0x1a8] sm:$0xff]  ;;  %v235_v32 = vld [vmem:[%s1666_s1 + $0x120] sm:$0xff]  ;;  %v958_v34 = vpack.c.bf16 %v204_v29, %v203_v28  ;;  %v222_v37 = vld [vmem:[%s1666_s1 + $0xb8] sm:$0xff]  ;;  %s1108_s18 = smul.u32 10, %s1671_s13  ;;  %s163_s24 = scalar_lea.vmem %s1668_s3, %s1671_s13 }
   0xf   : > { %v236_v33 = vld [vmem:[%s1666_s1 + $0x128] sm:$0xff]  ;;  %v988_v35 = vpack.c.bf16 %v252_v31, %v251_v30  ;;  %v205_v38 = vld [vmem:[%s1666_s1 + $0x30] sm:$0xff]  ;;  %987 = vmatpush3.bf16.msra.mxu1 %v986_v26  ;;  %957 = vmatprep.subr.bf16.mxu0 %v956_v27  ;;  %v960_v40 = vpack.c.bf16 %v222_v37, %v221_v36  ;;  %v206_v41 = vld [vmem:[%s1666_s1 + $0x38] sm:$0xff] }
  0x10   : > { %v990_v39 = vpack.c.bf16 %v236_v33, %v235_v32  ;;  %v253_v42 = vld [vmem:[%s1666_s1 + $0x1b0] sm:$0xff]  ;;  %v254_v43 = vld [vmem:[%s1666_s1 + $0x1b8] sm:$0xff]  ;;  %v223_v47 = vld [vmem:[%s1666_s1 + $0xc0] sm:$0xff]  ;;  %v962_v49 = vpack.c.bf16 %v206_v41, %v205_v38  ;;  %s1312_s10 = scalar_lea.vmem %s1665_s0, %s1108_s18 }
  0x11   : > { %989 = vmatprep.subr.bf16.mxu1 %v988_v35  ;;  %v992_v44 = vpack.c.bf16 %v254_v43, %v253_v42  ;;  %v237_v45 = vld [vmem:[%s1666_s1 + $0x130] sm:$0xff]  ;;  %v238_v46 = vld [vmem:[%s1666_s1 + $0x138] sm:$0xff]  ;;  %v224_v48 = vld [vmem:[%s1666_s1 + $0xc8] sm:$0xff]  ;;  %959 = vmatpush3.bf16.msra.mxu0 %v958_v34 }
  0x12   : > { %v255_v50 = vld [vmem:[%s1666_s1 + $0x1c0] sm:$0xff]  ;;  %v256_v51 = vld [vmem:[%s1666_s1 + $0x1c8] sm:$0xff]  ;;  %961 = vmatprep.subr.bf16.mxu0 %v960_v40  ;;  %v994_v52 = vpack.c.bf16 %v238_v46, %v237_v45  ;;  %v964_v53 = vpack.c.bf16 %v224_v48, %v223_v47  ;;  %v225_v59 = vld [vmem:[%s1666_s1 + $0xd0] sm:$0xff] }
  0x13   : > { %991 = vmatpush3.bf16.msra.mxu1 %v990_v39  ;;  %v207_v54 = vld [vmem:[%s1666_s1 + $0x40] sm:$0xff]  ;;  %v208_v55 = vld [vmem:[%s1666_s1 + $0x48] sm:$0xff]  ;;  %v996_v57 = vpack.c.bf16 %v256_v51, %v255_v50  ;;  %v226_v60 = vld [vmem:[%s1666_s1 + $0xd8] sm:$0xff] }
  0x14   : > { %v239_v56 = vld [vmem:[%s1666_s1 + $0x140] sm:$0xff]  ;;  %993 = vmatprep.subr.bf16.mxu1 %v992_v44  ;;  %v240_v58 = vld [vmem:[%s1666_s1 + $0x148] sm:$0xff]  ;;  %v257_v61 = vld [vmem:[%s1666_s1 + $0x1d0] sm:$0xff]  ;;  %v966_v63 = vpack.c.bf16 %v208_v55, %v207_v54  ;;  %v968_v1 = vpack.c.bf16 %v226_v60, %v225_v59 }
  0x15   : > { %v258_v62 = vld [vmem:[%s1666_s1 + $0x1d8] sm:$0xff]  ;;  %963 = vmatpush3.bf16.msra.mxu0 %v962_v49  ;;  %v998_v0 = vpack.c.bf16 %v240_v58, %v239_v56  ;;  %v209_v2 = vld [vmem:[%s1666_s1 + $0x50] sm:$0xff]  ;;  %v227_v7 = vld [vmem:[%s1666_s1 + $0xe0] sm:$0xff] }
  0x16   : > { %965 = vmatprep.subr.bf16.mxu0 %v964_v53  ;;  %v210_v3 = vld [vmem:[%s1666_s1 + $0x58] sm:$0xff]  ;;  %v241_v4 = vld [vmem:[%s1666_s1 + $0x150] sm:$0xff]  ;;  %v1000_v5 = vpack.c.bf16 %v258_v62, %v257_v61  ;;  %v228_v8 = vld [vmem:[%s1666_s1 + $0xe8] sm:$0xff] }
  0x17   : > { %995 = vmatpush3.bf16.msra.mxu1 %v994_v52  ;;  %v242_v6 = vld [vmem:[%s1666_s1 + $0x158] sm:$0xff]  ;;  %v259_v9 = vld [vmem:[%s1666_s1 + $0x1e0] sm:$0xff]  ;;  %v260_v10 = vld [vmem:[%s1666_s1 + $0x1e8] sm:$0xff]  ;;  %v970_v11 = vpack.c.bf16 %v210_v3, %v209_v2  ;;  %v972_v14 = vpack.c.bf16 %v228_v8, %v227_v7 }
  0x18   : > { %997 = vmatprep.subr.bf16.mxu1 %v996_v57  ;;  %v174_v12 = vld [vmem:[%s1312_s10] sm:$0xff]  ;;  %v1002_v13 = vpack.c.bf16 %v242_v6, %v241_v4  ;;  %v212_v16 = vld [vmem:[%s1666_s1 + $0x68] sm:$0xff]  ;;  %v1004_v19 = vpack.c.bf16 %v260_v10, %v259_v9  ;;  %v229_v21 = vld [vmem:[%s1666_s1 + $0xf0] sm:$0xff] }
  0x19   : > { %967 = vmatpush3.bf16.msra.mxu0 %v966_v63  ;;  %v211_v15 = vld [vmem:[%s1666_s1 + $0x60] sm:$0xff]  ;;  %v176_v18 = vmul.f32 25.394056, %v174_v12  ;;  %v244_v20 = vld [vmem:[%s1666_s1 + $0x168] sm:$0xff]  ;;  %v230_v22 = vld [vmem:[%s1666_s1 + $0xf8] sm:$0xff] }
  0x1a   : > { %969 = vmatprep.subr.bf16.mxu0 %v968_v1  ;;  %v243_v17 = vld [vmem:[%s1666_s1 + $0x160] sm:$0xff]  ;;  %v261_v23 = vld [vmem:[%s1666_s1 + $0x1f0] sm:$0xff]  ;;  %v262_v24 = vld [vmem:[%s1666_s1 + $0x1f8] sm:$0xff]  ;;  %v974_v26 = vpack.c.bf16 %v212_v16, %v211_v15  ;;  %v976_v28 = vpack.c.bf16 %v230_v22, %v229_v21 }
  0x1b   : > { %999 = vmatpush3.bf16.msra.mxu1 %v998_v0  ;;  %v178_v25 = vadd.f32 0.11726224, %v176_v18  ;;  %v1006_v27 = vpack.c.bf16 %v244_v20, %v243_v17  ;;  %v213_v29 = vld [vmem:[%s1666_s1 + $0x70] sm:$0xff]  ;;  %v214_v30 = vld [vmem:[%s1666_s1 + $0x78] sm:$0xff]  ;;  %v1008_v31 = vpack.c.bf16 %v262_v24, %v261_v23  ;;  %v279_v34 = vld [vmem:[%s1666_s1 + $0x280] sm:$0xff] }
  0x1c   : > { %1001 = vmatprep.subr.bf16.mxu1 %v1000_v5  ;;  %v245_v32 = vld [vmem:[%s1666_s1 + $0x170] sm:$0xff]  ;;  %v246_v33 = vld [vmem:[%s1666_s1 + $0x178] sm:$0xff]  ;;  %v280_v35 = vld [vmem:[%s1666_s1 + $0x288] sm:$0xff]  ;;  %v978_v36 = vpack.c.bf16 %v214_v30, %v213_v29 }
  0x1d   : > { %971 = vmatpush3.bf16.msra.mxu0 %v970_v11  ;;  %180 = vst [vmem:[#allocation2] ss:$8 sm:$0xf] %v178_v25  ;;  %181 = vst [vmem:[#allocation2] ss:$8 sm:$0xf0] %v178_v25  ;;  %v1010_v39 = vpack.c.bf16 %v246_v33, %v245_v32  ;;  %v1012_v43 = vpack.c.bf16 %v280_v35, %v279_v34 }
  0x1e   : > { %973 = vmatprep.subr.bf16.mxu0 %v972_v14  ;;  %v311_v37 = vld [vmem:[%s1666_s1 + $0x380] sm:$0xff]  ;;  %v312_v38 = vld [vmem:[%s1666_s1 + $0x388] sm:$0xff]  ;;  %v281_v45 = vld [vmem:[%s1666_s1 + $0x290] sm:$0xff] }
  0x1f   : > { %1003 = vmatpush3.bf16.msra.mxu1 %v1002_v13  ;;  %v263_v40 = vld [vmem:[%s1666_s1 + $0x200] sm:$0xff]  ;;  %v264_v41 = vld [vmem:[%s1666_s1 + $0x208] sm:$0xff]  ;;  %v282_v46 = vld [vmem:[%s1666_s1 + $0x298] sm:$0xff]  ;;  %v1044_v47 = vpack.c.bf16 %v312_v38, %v311_v37 }
  0x20   : > { %1005 = vmatprep.subr.bf16.mxu1 %v1004_v19  ;;  %v295_v42 = vld [vmem:[%s1666_s1 + $0x300] sm:$0xff]  ;;  %v296_v44 = vld [vmem:[%s1666_s1 + $0x308] sm:$0xff]  ;;  %v265_v48 = vld [vmem:[%s1666_s1 + $0x210] sm:$0xff]  ;;  %v1014_v54 = vpack.c.bf16 %v264_v41, %v263_v40  ;;  %v1016_v57 = vpack.c.bf16 %v282_v46, %v281_v45 }
  0x21   : > { %975 = vmatpush3.bf16.msra.mxu0 %v974_v26  ;;  %v313_v49 = vld [vmem:[%s1666_s1 + $0x390] sm:$0xff]  ;;  %v314_v50 = vld [vmem:[%s1666_s1 + $0x398] sm:$0xff]  ;;  %v1046_v56 = vpack.c.bf16 %v296_v44, %v295_v42  ;;  %v283_v62 = vld [vmem:[%s1666_s1 + $0x2a0] sm:$0xff] }
  0x22   : > { %977 = vmatprep.subr.bf16.mxu0 %v976_v28  ;;  %v266_v58 = vld [vmem:[%s1666_s1 + $0x218] sm:$0xff]  ;;  %v297_v59 = vld [vmem:[%s1666_s1 + $0x310] sm:$0xff]  ;;  %v1048_v60 = vpack.c.bf16 %v314_v50, %v313_v49  ;;  %v284_v63 = vld [vmem:[%s1666_s1 + $0x2a8] sm:$0xff] }
  0x23   : > { %1007 = vmatpush3.bf16.msra.mxu1 %v1006_v27  ;;  %v298_v61 = vld [vmem:[%s1666_s1 + $0x318] sm:$0xff]  ;;  %v315_v0 = vld [vmem:[%s1666_s1 + $0x3a0] sm:$0xff]  ;;  %v316_v1 = vld [vmem:[%s1666_s1 + $0x3a8] sm:$0xff]  ;;  %v1018_v2 = vpack.c.bf16 %v266_v58, %v265_v48  ;;  %v1020_v4 = vpack.c.bf16 %v284_v63, %v283_v62  ;;  %v182_v62 = vlaneseq }
  0x24   : > { %1009 = vmatprep.subr.bf16.mxu1 %v1008_v31  ;;  %v190_v51 = vld [vmem:[#allocation2 + $0x8] sm:$0xff]  ;;  %v189_v52 = vld [vmem:[#allocation2] sm:$0xff]  ;;  %v192_v53 = vld [vmem:[#allocation2 + $0x18] sm:$0xff]  ;;  %v1050_v3 = vpack.c.bf16 %v298_v61, %v297_v59  ;;  %v1052_v8 = vpack.c.bf16 %v316_v1, %v315_v0 }
  0x25   : > { %979 = vmatpush3.bf16.msra.mxu0 %v978_v36  ;;  %430 = vmatprep.mubr.f32.mxu0 %v190_v51  ;;  %v191_v55 = vld [vmem:[#allocation2 + $0x10] sm:$0xff]  ;;  %v267_v5 = vld [vmem:[%s1666_s1 + $0x220] sm:$0xff]  ;;  %v268_v6 = vld [vmem:[%s1666_s1 + $0x228] sm:$0xff]  ;;  %vm184_vm0 = vcmp.lt.s32.totalorder %v182_v62, 213 }
  0x26   : > { %1013 = vmatprep.subr.bf16.mxu0 %v1012_v43  ;;  %500 = vmatprep.mubr.f32.mxu1 %v192_v53  ;;  %v299_v7 = vld [vmem:[%s1666_s1 + $0x320] sm:$0xff]  ;;  %v300_v9 = vld [vmem:[%s1666_s1 + $0x328] sm:$0xff]  ;;  %v285_v10 = vld [vmem:[%s1666_s1 + $0x2b0] sm:$0xff]  ;;  %v1022_v14 = vpack.c.bf16 %v268_v6, %v267_v5 }
  0x27   : > { %1011 = vmatpush3.bf16.msra.mxu1 %v1010_v39  ;;  %v286_v11 = vld [vmem:[%s1666_s1 + $0x2b8] sm:$0xff]  ;;  %v317_v12 = vld [vmem:[%s1666_s1 + $0x3b0] sm:$0xff]  ;;  %v1054_v15 = vpack.c.bf16 %v300_v9, %v299_v7  ;;  %v287_v22 = vld [vmem:[%s1666_s1 + $0x2c0] sm:$0xff] }
  0x28   : > { %431 = vmatmul.mubr.f32.vlgmr.msra.gmra.mrb[0].mxu0 %v189_v52  ;;  %1045 = vmatprep.subr.bf16.mxu1 %v1044_v47  ;;  %v318_v13 = vld [vmem:[%s1666_s1 + $0x3b8] sm:$0xff]  ;;  %v1024_v16 = vpack.c.bf16 %v286_v11, %v285_v10  ;;  %v269_v17 = vld [vmem:[%s1666_s1 + $0x230] sm:$0xff]  ;;  %v288_v23 = vld [vmem:[%s1666_s1 + $0x2c8] sm:$0xff] }
  0x29   : > { %1015 = vmatpush3.bf16.msra.mxu0 %v1014_v54  ;;  %v270_v18 = vld [vmem:[%s1666_s1 + $0x238] sm:$0xff]  ;;  %v301_v19 = vld [vmem:[%s1666_s1 + $0x330] sm:$0xff]  ;;  %v1056_v20 = vpack.c.bf16 %v318_v13, %v317_v12  ;;  %v319_v24 = vld [vmem:[%s1666_s1 + $0x3c0] sm:$0xff]  ;;  %v1028_v30 = vpack.c.bf16 %v288_v23, %v287_v22 }
  0x2a   : > { %501 = vmatmul.mubr.f32.vlgmr.msra.gmra.mrb[0].mxu1 %v191_v55  ;;  %1017 = vmatprep.subr.bf16.mxu0 %v1016_v57  ;;  %v302_v21 = vld [vmem:[%s1666_s1 + $0x338] sm:$0xff]  ;;  %v320_v25 = vld [vmem:[%s1666_s1 + $0x3c8] sm:$0xff]  ;;  %v1026_v27 = vpack.c.bf16 %v270_v18, %v269_v17  ;;  %v271_v28 = vld [vmem:[%s1666_s1 + $0x240] sm:$0xff] }
  0x2b   : > { %1047 = vmatpush3.bf16.msra.mxu1 %v1046_v56  ;;  %v194_v26 = vld [vmem:[#allocation2 + $0x28] sm:$0xff]  ;;  %v1058_v29 = vpack.c.bf16 %v302_v21, %v301_v19  ;;  %v303_v32 = vld [vmem:[%s1666_s1 + $0x340] sm:$0xff]  ;;  %v196_v33 = vld [vmem:[#allocation2 + $0x38] sm:$0xff]  ;;  %v1060_v34 = vpack.c.bf16 %v320_v25, %v319_v24 }
  0x2c   : > { %1049 = vmatprep.subr.bf16.mxu1 %v1048_v60  ;;  %570 = vmatprep.mubr.f32.mxu0 %v194_v26  ;;  %v272_v31 = vld [vmem:[%s1666_s1 + $0x248] sm:$0xff]  ;;  %v289_v36 = vld [vmem:[%s1666_s1 + $0x2d0] sm:$0xff]  ;;  %v290_v37 = vld [vmem:[%s1666_s1 + $0x2d8] sm:$0xff] }
  0x2d   : > { %1019 = vmatpush3.bf16.msra.mxu0 %v1018_v2  ;;  %v304_v35 = vld [vmem:[%s1666_s1 + $0x348] sm:$0xff]  ;;  %640 = vmatprep.mubr.f32.mxu1 %v196_v33  ;;  %v321_v38 = vld [vmem:[%s1666_s1 + $0x3d0] sm:$0xff]  ;;  %v322_v39 = vld [vmem:[%s1666_s1 + $0x3d8] sm:$0xff]  ;;  %v1030_v40 = vpack.c.bf16 %v272_v31, %v271_v28  ;;  %v1032_v42 = vpack.c.bf16 %v290_v37, %v289_v36 }
  0x2e   : > { %1021 = vmatprep.subr.bf16.mxu0 %v1020_v4  ;;  %v1062_v41 = vpack.c.bf16 %v304_v35, %v303_v32  ;;  %v273_v43 = vld [vmem:[%s1666_s1 + $0x250] sm:$0xff]  ;;  %v274_v44 = vld [vmem:[%s1666_s1 + $0x258] sm:$0xff]  ;;  %v1064_v46 = vpack.c.bf16 %v322_v39, %v321_v38  ;;  %v291_v48 = vld [vmem:[%s1666_s1 + $0x2e0] sm:$0xff] }
  0x2f   : > { %1051 = vmatpush3.bf16.msra.mxu1 %v1050_v3  ;;  %v305_v45 = vld [vmem:[%s1666_s1 + $0x350] sm:$0xff]  ;;  %v306_v47 = vld [vmem:[%s1666_s1 + $0x358] sm:$0xff]  ;;  %v292_v49 = vld [vmem:[%s1666_s1 + $0x2e8] sm:$0xff]  ;;  %v1034_v52 = vpack.c.bf16 %v274_v44, %v273_v43 }
  0x30   : > { %1053 = vmatprep.subr.bf16.mxu1 %v1052_v8  ;;  %v323_v50 = vld [vmem:[%s1666_s1 + $0x3e0] sm:$0xff]  ;;  %v324_v51 = vld [vmem:[%s1666_s1 + $0x3e8] sm:$0xff]  ;;  %v1066_v53 = vpack.c.bf16 %v306_v47, %v305_v45  ;;  %v1036_v54 = vpack.c.bf16 %v292_v49, %v291_v48  ;;  %v293_v60 = vld [vmem:[%s1666_s1 + $0x2f0] sm:$0xff] }
  0x31   : > { %1023 = vmatpush3.bf16.msra.mxu0 %v1022_v14  ;;  %v275_v55 = vld [vmem:[%s1666_s1 + $0x260] sm:$0xff]  ;;  %v276_v56 = vld [vmem:[%s1666_s1 + $0x268] sm:$0xff]  ;;  %v1068_v58 = vpack.c.bf16 %v324_v51, %v323_v50  ;;  %v294_v61 = vld [vmem:[%s1666_s1 + $0x2f8] sm:$0xff] }
  0x32   : > { %1025 = vmatprep.subr.bf16.mxu0 %v1024_v16  ;;  %v307_v57 = vld [vmem:[%s1666_s1 + $0x360] sm:$0xff]  ;;  %v308_v59 = vld [vmem:[%s1666_s1 + $0x368] sm:$0xff]  ;;  %v325_v63 = vld [vmem:[%s1666_s1 + $0x3f0] sm:$0xff]  ;;  %v1038_v1 = vpack.c.bf16 %v276_v56, %v275_v55  ;;  %v1040_v4 = vpack.c.bf16 %v294_v61, %v293_v60 }
  0x33   : > { %1055 = vmatpush3.bf16.msra.mxu1 %v1054_v15  ;;  %v326_v0 = vld [vmem:[%s1666_s1 + $0x3f8] sm:$0xff]  ;;  %v175_v2 = vld [vmem:[%s1312_s10 + $0x8] sm:$0x3]  ;;  %v1070_v3 = vpack.c.bf16 %v308_v59, %v307_v57  ;;  %v277_v5 = vld [vmem:[%s1666_s1 + $0x270] sm:$0xff] }
  0x34   : > { %1057 = vmatprep.subr.bf16.mxu1 %v1056_v20  ;;  %v278_v6 = vld [vmem:[%s1666_s1 + $0x278] sm:$0xff]  ;;  %v309_v7 = vld [vmem:[%s1666_s1 + $0x370] sm:$0xff]  ;;  %v177_v8 = vmul.f32 25.394056, %v175_v2  ;;  %v1072_v9 = vpack.c.bf16 %v326_v0, %v325_v63  ;;  %v343_v11 = vld [vmem:[%s1666_s1 + $0x480] sm:$0xff] }
  0x35   : > { %1027 = vmatpush3.bf16.msra.mxu0 %v1026_v27  ;;  %v310_v10 = vld [vmem:[%s1666_s1 + $0x378] sm:$0xff]  ;;  %v344_v12 = vld [vmem:[%s1666_s1 + $0x488] sm:$0xff]  ;;  %v1042_v14 = vpack.c.bf16 %v278_v6, %v277_v5  ;;  %v327_v17 = vld [vmem:[%s1666_s1 + $0x400] sm:$0xff] }
  0x36   : > { %1029 = vmatprep.subr.bf16.mxu0 %v1028_v30  ;;  %v179_v13 = vadd.f32 0.11726224, %v177_v8  ;;  %v1074_v15 = vpack.c.bf16 %v310_v10, %v309_v7  ;;  %v1076_v16 = vpack.c.bf16 %v344_v12, %v343_v11  ;;  %v328_v18 = vld [vmem:[%s1666_s1 + $0x408] sm:$0xff]  ;;  %v345_v19 = vld [vmem:[%s1666_s1 + $0x490] sm:$0xff]  ;;  %v346_v20 = vld [vmem:[%s1666_s1 + $0x498] sm:$0xff] }
  0x37   : > { %1059 = vmatpush3.bf16.msra.mxu1 %v1058_v29  ;;  %v193_v21 = vld [vmem:[#allocation2 + $0x20] sm:$0xff]  ;;  %v1078_v22 = vpack.c.bf16 %v328_v18, %v327_v17  ;;  %v195_v23 = vld [vmem:[#allocation2 + $0x30] sm:$0xff]  ;;  %v1080_v24 = vpack.c.bf16 %v346_v20, %v345_v19  ;;  %v330_v26 = vld [vmem:[%s1666_s1 + $0x418] sm:$0xff] }
  0x38   : > { %1061 = vmatprep.subr.bf16.mxu1 %v1060_v34  ;;  %187 = vst.msk [vmem:[#allocation2 + $0x40] ss:$8 sm:$0x3] %vm184_vm0, %v179_v13  ;;  %v329_v25 = vld [vmem:[%s1666_s1 + $0x410] sm:$0xff]  ;;  %v347_v27 = vld [vmem:[%s1666_s1 + $0x4a0] sm:$0xff]  ;;  %v348_v28 = vld [vmem:[%s1666_s1 + $0x4a8] sm:$0xff] }
  0x39   : > { %1031 = vmatpush3.bf16.msra.mxu0 %v1030_v40  ;;  %v1082_v29 = vpack.c.bf16 %v330_v26, %v329_v25  ;;  %v1084_v31 = vpack.c.bf16 %v348_v28, %v347_v27  ;;  %v331_v32 = vld [vmem:[%s1666_s1 + $0x420] sm:$0xff]  ;;  %v332_v33 = vld [vmem:[%s1666_s1 + $0x428] sm:$0xff]  ;;  %v349_v34 = vld [vmem:[%s1666_s1 + $0x4b0] sm:$0xff] }
  0x3a   : > { %1033 = vmatprep.subr.bf16.mxu0 %v1032_v42  ;;  %v350_v35 = vld [vmem:[%s1666_s1 + $0x4b8] sm:$0xff]  ;;  %v1086_v36 = vpack.c.bf16 %v332_v33, %v331_v32  ;;  %v333_v38 = vld [vmem:[%s1666_s1 + $0x430] sm:$0xff]  ;;  %v351_v40 = vld [vmem:[%s1666_s1 + $0x4c0] sm:$0xff] }
  0x3b   : > { %1063 = vmatpush3.bf16.msra.mxu1 %v1062_v41  ;;  %v1088_v37 = vpack.c.bf16 %v350_v35, %v349_v34  ;;  %v334_v39 = vld [vmem:[%s1666_s1 + $0x438] sm:$0xff]  ;;  %v352_v41 = vld [vmem:[%s1666_s1 + $0x4c8] sm:$0xff]  ;;  %v335_v44 = vld [vmem:[%s1666_s1 + $0x440] sm:$0xff] }
  0x3c   : > { %1065 = vmatprep.subr.bf16.mxu1 %v1064_v46  ;;  %v1090_v42 = vpack.c.bf16 %v334_v39, %v333_v38  ;;  %v1092_v43 = vpack.c.bf16 %v352_v41, %v351_v40  ;;  %v336_v45 = vld [vmem:[%s1666_s1 + $0x448] sm:$0xff]  ;;  %v353_v46 = vld [vmem:[%s1666_s1 + $0x4d0] sm:$0xff]  ;;  %v354_v47 = vld [vmem:[%s1666_s1 + $0x4d8] sm:$0xff] }
  0x3d   : > { %1035 = vmatpush3.bf16.msra.mxu0 %v1034_v52  ;;  %v1094_v48 = vpack.c.bf16 %v336_v45, %v335_v44  ;;  %v1096_v49 = vpack.c.bf16 %v354_v47, %v353_v46  ;;  %v337_v50 = vld [vmem:[%s1666_s1 + $0x450] sm:$0xff]  ;;  %v338_v51 = vld [vmem:[%s1666_s1 + $0x458] sm:$0xff]  ;;  %v355_v52 = vld [vmem:[%s1666_s1 + $0x4e0] sm:$0xff] }
  0x3e   : > { %1037 = vmatprep.subr.bf16.mxu0 %v1036_v54  ;;  %v1098_v54 = vpack.c.bf16 %v338_v51, %v337_v50  ;;  %v339_v56 = vld [vmem:[%s1666_s1 + $0x460] sm:$0xff]  ;;  %v340_v57 = vld [vmem:[%s1666_s1 + $0x468] sm:$0xff]  ;;  %v358_v59 = vld [vmem:[%s1666_s1 + $0x4f8] sm:$0xff] }
  0x3f   : > { %1067 = vmatpush3.bf16.msra.mxu1 %v1066_v53  ;;  %v198_v30 = vld [vmem:[#allocation2 + $0x48] sm:$0xff]  ;;  %v1102_v60 = vpack.c.bf16 %v340_v57, %v339_v56  ;;  %v341_v62 = vld [vmem:[%s1666_s1 + $0x470] sm:$0xff]  ;;  %v342_v63 = vld [vmem:[%s1666_s1 + $0x478] sm:$0xff] }
  0x40   : > { %1069 = vmatprep.subr.bf16.mxu1 %v1068_v58  ;;  %v356_v53 = vld [vmem:[%s1666_s1 + $0x4e8] sm:$0xff]  ;;  %v357_v58 = vld [vmem:[%s1666_s1 + $0x4f0] sm:$0xff]  ;;  %v1106_v0 = vpack.c.bf16 %v342_v63, %v341_v62 }
  0x41   : > { %1039 = vmatpush3.bf16.msra.mxu0 %v1038_v1  ;;  %v1100_v55 = vpack.c.bf16 %v356_v53, %v355_v52  ;;  %v1104_v61 = vpack.c.bf16 %v358_v59, %v357_v58  ;;  %v197_v1 = vld [vmem:[#allocation2 + $0x40] sm:$0xff] }
  0x42   : > { %1041 = vmatprep.subr.bf16.mxu0 %v1040_v4 }
  0x43   : > { %1071 = vmatpush3.bf16.msra.mxu1 %v1070_v3  ;;  %v770_v3 = vld [vmem:[%s1667_s2] ss:$0 sm:$0xff] }
  0x44   : > { %1073 = vmatprep.subr.bf16.mxu1 %v1072_v9 }
  0x45   : > { %1043 = vmatpush3.bf16.msra.mxu0 %v1042_v14 }
  0x46   : > { %1077 = vmatprep.subr.bf16.mxu0 %v1076_v16 }
  0x47   : > { %1075 = vmatpush3.bf16.msra.mxu1 %v1074_v15 }
  0x48   : > { %571 = vmatmul.mubr.f32.vlgmr.msra.gmra.mrb[2].mxu0 %v193_v21 }
  0x49   : > { %1079 = vmatpush3.bf16.msra.mxu0 %v1078_v22  ;;  %710 = vmatprep.mubr.f32.mxu0 %v198_v30 }
  0x4a   : > { %641 = vmatmul.mubr.f32.vlgmr.msra.gmra.mrb[2].mxu1 %v195_v23  ;;  %1081 = vmatprep.subr.bf16.mxu0 %v1080_v24 }
  0x4d   : > { %1083 = vmatpush3.bf16.msra.mxu0 %v1082_v29 }
  0x4e   : > { %1085 = vmatprep.subr.bf16.mxu0 %v1084_v31 }
  0x51   : > { %1087 = vmatpush3.bf16.msra.mxu0 %v1086_v36 }
  0x52   : > { %1089 = vmatprep.subr.bf16.mxu0 %v1088_v37 }
  0x55   : > { %1091 = vmatpush3.bf16.msra.mxu0 %v1090_v42 }
  0x56   : > { %1093 = vmatprep.subr.bf16.mxu0 %v1092_v43 }
  0x59   : > { %1095 = vmatpush3.bf16.msra.mxu0 %v1094_v48 }
  0x5a   : > { %1097 = vmatprep.subr.bf16.mxu0 %v1096_v49 }
  0x5d   : > { %1099 = vmatpush3.bf16.msra.mxu0 %v1098_v54 }
  0x5e   : > { %1101 = vmatprep.subr.bf16.mxu0 %v1100_v55 }
  0x61   : > { %1103 = vmatpush3.bf16.msra.mxu0 %v1102_v60 }
  0x62   : > { %1105 = vmatprep.subr.bf16.mxu0 %v1104_v61 }
  0x65   : > { %1107 = vmatpush3.bf16.msra.mxu0 %v1106_v0 }
  0x68   : > { %711 = vmatmul.mubr.f32.vlgmr.msra.gmra.mrb[4].mxu0 %v197_v1 }
  0xfb   : > { %v805_v2 = vpop.f32.mrb[0].mxu0 }
  0xfc   : > { %v806_v4 = vpop.f32.mrb[1].mxu0 }
  0xfd   : > { %v840_v5 = vpop.f32.mrb[0].mxu1  ;;  %v807_v6 = vadd.f32 %v806_v4, %v805_v2 }
  0xfe   : > { %v841_v7 = vpop.f32.mrb[1].mxu1 }
  0xff   : > { %v842_v8 = vadd.f32 %v841_v7, %v840_v5  ;;  %v433_v9 = vadd.f32 %v807_v6, %v770_v3 }
 0x101   : > { %v503_v10 = vadd.f32 %v842_v8, %v433_v9 }
 0x11b   : > { %v875_v11 = vpop.f32.mrb[2].mxu0 }
 0x11c   : > { %v876_v12 = vpop.f32.mrb[3].mxu0 }
 0x11d   : > { %v910_v13 = vpop.f32.mrb[2].mxu1  ;;  %v877_v14 = vadd.f32 %v876_v12, %v875_v11 }
 0x11e   : > { %v911_v15 = vpop.f32.mrb[3].mxu1 }
 0x11f   : > { %v912_v16 = vadd.f32 %v911_v15, %v910_v13  ;;  %v573_v17 = vadd.f32 %v877_v14, %v503_v10 }
 0x121   : > { %v643_v18 = vadd.f32 %v912_v16, %v573_v17 }
 0x13b   : > { %v945_v19 = vpop.f32.mrb[4].mxu0 }
 0x13c   : > { %v946_v20 = vpop.f32.mrb[5].mxu0 }
 0x13d   : > { %v947_v21 = vadd.f32 %v946_v20, %v945_v19 }
 0x13f   : > { %v713_v22 = vadd.f32 %v947_v21, %v643_v18 }
 0x141   : > { %v716_v23 = vand.u32 2147483647, %v713_v22 }
 0x143   : > { %717 = vst [vmem:[%s163_s24] sm:$0x1] %v716_v23 }
 0x144 PF: > { %s13_s12 = sadd.s32 1, %s1124_s12  }
 0x145   : > { %p10_p4 = scmp.ge.s32.totalorder %s13_s12, 4  }
 0x147   :  { %12 = sbr.rel (!%p10_p4) target bundleno = 1 (0x1), region = 63 }

</bundles_post_ra>
